<compile_context>
chip_gen: v5e
topology: v5e:2x2
jax: 0.10.0
libtpu: 0.0.40
codegen_flags: <defaults>
</compile_context>

<pallas_src>
import functools

import jax
import jax.numpy as jnp
from jax import lax
from jax.experimental import pallas as pl
from jax.experimental.pallas import tpu as pltpu

EPS = 1e-5
_VPU_CONTRACT_MAX = 16  # K at or below this -> VPU broadcast-FMA, not MXU


# ----------------------------- Pallas kernel --------------------------------
def _contract(w, x):
    """(Cout, K) @ (K, TP) -> (Cout, TP), pixels stay on the lane axis.

    For tiny K the MXU systolic fill/drain latency exceeds the useful work,
    so unroll a broadcast-multiply-accumulate on the (otherwise idle) VPU.
    """
    k = x.shape[0]
    if k <= _VPU_CONTRACT_MAX:
        acc = w[:, 0:1] * x[0:1, :]
        for i in range(1, k):
            acc = acc + w[:, i:i + 1] * x[i:i + 1, :]
        return acc
    return jnp.dot(w, x, preferred_element_type=jnp.float32)


def fused_1x1_block_kernel(x_ref, p_ref, o_ref, *, cin, cout):
    # x_ref : (Cin, TP)               input slab, pixels on the lane axis
    # p_ref : (Cout, Cin+Cout+2)      packed [w1 | w2 | s1 | s2] (BN folded)
    # o_ref : (Cout, TP)              output slab
    x = x_ref[...].astype(jnp.float32)                       # (Cin, TP)
    w1 = p_ref[:, 0:cin]                                     # (Cout, Cin)
    w2 = p_ref[:, cin:cin + cout]                            # (Cout, Cout)
    s1 = p_ref[:, cin + cout:cin + cout + 1]                 # (Cout, 1)
    s2 = p_ref[:, cin + cout + 1:cin + cout + 2]             # (Cout, 1)

    y = jnp.maximum(_contract(w1, x) + s1, 0.0)              # conv1+BN1+ReLU
    y = jnp.maximum(_contract(w2, y) + s2, 0.0)              # conv2+BN2+ReLU
    o_ref[...] = y.astype(o_ref.dtype)


# ------------------------------- wrapper -------------------------------------
def _fold_bn_into_conv(p):
    """Fold eval-mode BN (and the conv bias) into (scaled weight, shift)."""
    cout = p["w"].shape[0]
    scale = p["gamma"] / jnp.sqrt(p["var"] + EPS)                 # (Cout,)
    w = p["w"].reshape(cout, -1) * scale[:, None]                 # (Cout, Cin)
    shift = (p["b"] - p["mean"]) * scale + p["beta"]              # (Cout,)
    return w.astype(jnp.float32), shift.reshape(cout, 1).astype(jnp.float32)


def _pick_pixel_tile(p_total, cin, cout, dtype_bytes=4):
    """Largest lane-aligned pixel tile that fits a conservative VMEM budget."""
    try:
        vmem_cap = int(pltpu.get_tpu_info().vmem_capacity_bytes)
    except Exception:
        vmem_cap = 64 * 1024 * 1024                   # v7x-safe fallback
    budget = vmem_cap // 4                            # headroom for everything else
    per_pixel = 2 * (cin + cout) * dtype_bytes        # double-buffered in + out
    max_tile = max(128, (budget // per_pixel) // 128 * 128)
    if p_total <= max_tile:
        return p_total                                # single grid step
    if p_total % 128 != 0:
        # TODO(synk): ragged pixel count -> masked lane stores (perf cliff only)
        return p_total
    best, t = 128, 128
    while t <= max_tile and t <= p_total:
        if p_total % t == 0:
            best = t
        t += 128
    return best


def conv_block_1_forward(x_nchw, p1, p2):
    """Fused Pallas forward. Input/output NCHW, like the PyTorch module."""
    N, Cin, H, W = x_nchw.shape
    Cout = p1["w"].shape[0]
    P = N * H * W

    # Fold the batch into the pixel/lane axis: (Cin, N*H*W).
    x = jnp.transpose(x_nchw.reshape(N, Cin, H * W), (1, 0, 2)).reshape(Cin, P)

    w1, s1 = _fold_bn_into_conv(p1)                    # (Cout, Cin), (Cout, 1)
    w2, s2 = _fold_bn_into_conv(p2)                    # (Cout, Cout), (Cout, 1)
    params = jnp.concatenate([w1, w2, s1, s2], axis=1)  # (Cout, Cin+Cout+2)
    PW = Cin + Cout + 2

    TP = _pick_pixel_tile(P, Cin, Cout)
    num_steps = pl.cdiv(P, TP)
    # Latency-bound tiny grids must not be megacore-split (v7x); only larger
    # pixel counts with many independent tiles get "parallel".
    sem = "parallel" if num_steps >= 4 else "arbitrary"

    # Raise the scoped VMEM limit only if a large tile actually needs it.
    vmem_needed = 4 * (2 * (Cin + Cout) * TP + 2 * Cout * PW)
    vmem_limit = None
    if vmem_needed > 16 * 1024 * 1024:
        vmem_limit = min(2 * vmem_needed, 100 * 1024 * 1024)

    kernel = functools.partial(fused_1x1_block_kernel, cin=Cin, cout=Cout)
    out = pl.pallas_call(
        kernel,
        out_shape=jax.ShapeDtypeStruct((Cout, P), x_nchw.dtype),
        grid=(num_steps,),
        in_specs=[
            pl.BlockSpec((Cin, TP), lambda t: (0, t)),
            pl.BlockSpec((Cout, PW), lambda t: (0, 0)),
        ],
        out_specs=pl.BlockSpec((Cout, TP), lambda t: (0, t)),
        compiler_params=pltpu.CompilerParams(
            dimension_semantics=(sem,),
            vmem_limit_bytes=vmem_limit),
    )(x, params)

    return jnp.transpose(out.reshape(Cout, N, H * W), (1, 0, 2)).reshape(
        N, Cout, H, W)


# ---------------- pure-JAX reference (NCHW, mirrors PyTorch) ----------------
def ref_layer(x, p):
    y = lax.conv_general_dilated(
        x, p["w"], window_strides=(1, 1), padding="VALID",
        dimension_numbers=("NCHW", "OIHW", "NCHW"))
    y = y + p["b"][None, :, None, None]
    y = (y - p["mean"][None, :, None, None]) / jnp.sqrt(
        p["var"][None, :, None, None] + EPS)
    y = y * p["gamma"][None, :, None, None] + p["beta"][None, :, None, None]
    return jnp.maximum(y, 0.0)


def ref_forward(x, p1, p2):
    return ref_layer(ref_layer(x, p1), p2)


# ---------------- deterministic parameter init ----------------
def make_conv_bn_params(key, cin, cout):
    ks = jax.random.split(key, 6)
    bound = 1.0 / (cin * 1 * 1) ** 0.5
    return dict(
        w=jax.random.uniform(ks[0], (cout, cin, 1, 1), jnp.float32, -bound, bound),
        b=jax.random.uniform(ks[1], (cout,), jnp.float32, -bound, bound),
        gamma=jax.random.uniform(ks[2], (cout,), jnp.float32, 0.5, 1.5),
        beta=jax.random.uniform(ks[3], (cout,), jnp.float32, -0.5, 0.5),
        mean=jax.random.uniform(ks[4], (cout,), jnp.float32, -0.1, 0.1),
        var=jax.random.uniform(ks[5], (cout,), jnp.float32, 0.5, 1.5),
    )


if __name__ == "__main__":
    key = jax.random.PRNGKey(0)
    kx, k1, k2 = jax.random.split(key, 3)

    N, CH_IN, CH_OUT, H, W = 2, 4, 8, 16, 16
    x = jax.random.normal(kx, (N, CH_IN, H, W), jnp.float32)
    p1 = make_conv_bn_params(k1, CH_IN, CH_OUT)
    p2 = make_conv_bn_params(k2, CH_OUT, CH_OUT)

    out = jax.block_until_ready(conv_block_1_forward(x, p1, p2))
    ref = jax.block_until_ready(ref_forward(x, p1, p2))

    assert out.shape == (N, CH_OUT, H, W), out.shape
    max_err = float(jnp.max(jnp.abs(out - ref)))
    assert max_err < 5e-3, f"max abs error too large: {max_err}"
    print("KERNEL_OK")
</pallas_src>

<mosaic_0001>
module attributes {stable_mosaic.version = 11 : i64} {
  func.func @fused_1x1_block_kernel(%arg0: i32, %arg1: memref<4x512xf32, #tpu.memory_space<vmem>>, %arg2: memref<8x14xf32, #tpu.memory_space<vmem>>, %arg3: memref<8x512xf32, #tpu.memory_space<vmem>>) attributes {dimension_semantics = [#tpu.dimension_semantics<arbitrary>], iteration_bounds = array<i64: 1>, scalar_prefetch = 0 : i64, scratch_operands = 0 : i64, tpu.core_type = #tpu.core_type<tc>, window_params = [{transform_indices = @transform_0, window_bounds = array<i64: 4, 512>}, {pipeline_mode = #tpu.pipeline_mode<synchronous>, transform_indices = @transform_1, window_bounds = array<i64: 8, 14>}, {transform_indices = @transform_2, window_bounds = array<i64: 8, 512>}]} {
    %c0 = arith.constant 0 : index
    %c0_0 = arith.constant 0 : index
    %0 = vector.load %arg1[%c0, %c0_0] : memref<4x512xf32, #tpu.memory_space<vmem>>, vector<4x512xf32>
    %c0_1 = arith.constant 0 : index
    %c0_2 = arith.constant 0 : index
    %1 = vector.load %arg2[%c0_1, %c0_2] : memref<8x14xf32, #tpu.memory_space<vmem>>, vector<8x4xf32>
    %c0_3 = arith.constant 0 : index
    %c4 = arith.constant 4 : index
    %2 = vector.load %arg2[%c0_3, %c4] : memref<8x14xf32, #tpu.memory_space<vmem>>, vector<8x8xf32>
    %c0_4 = arith.constant 0 : index
    %c12 = arith.constant 12 : index
    %3 = vector.load %arg2[%c0_4, %c12] : memref<8x14xf32, #tpu.memory_space<vmem>>, vector<8x1xf32>
    %c0_5 = arith.constant 0 : index
    %c13 = arith.constant 13 : index
    %4 = vector.load %arg2[%c0_5, %c13] : memref<8x14xf32, #tpu.memory_space<vmem>>, vector<8x1xf32>
    %5 = vector.extract_strided_slice %1 {offsets = [0, 0], sizes = [8, 1], strides = [1, 1]} : vector<8x4xf32> to vector<8x1xf32>
    %6 = vector.extract_strided_slice %0 {offsets = [0, 0], sizes = [1, 512], strides = [1, 1]} : vector<4x512xf32> to vector<1x512xf32>
    %7 = vector.broadcast %5 : vector<8x1xf32> to vector<8x512xf32>
    %8 = vector.broadcast %6 : vector<1x512xf32> to vector<8x512xf32>
    %9 = arith.mulf %7, %8 : vector<8x512xf32>
    %10 = vector.extract_strided_slice %1 {offsets = [0, 1], sizes = [8, 1], strides = [1, 1]} : vector<8x4xf32> to vector<8x1xf32>
    %11 = vector.extract_strided_slice %0 {offsets = [1, 0], sizes = [1, 512], strides = [1, 1]} : vector<4x512xf32> to vector<1x512xf32>
    %12 = vector.broadcast %10 : vector<8x1xf32> to vector<8x512xf32>
    %13 = vector.broadcast %11 : vector<1x512xf32> to vector<8x512xf32>
    %14 = arith.mulf %12, %13 : vector<8x512xf32>
    %15 = arith.addf %9, %14 : vector<8x512xf32>
    %16 = vector.extract_strided_slice %1 {offsets = [0, 2], sizes = [8, 1], strides = [1, 1]} : vector<8x4xf32> to vector<8x1xf32>
    %17 = vector.extract_strided_slice %0 {offsets = [2, 0], sizes = [1, 512], strides = [1, 1]} : vector<4x512xf32> to vector<1x512xf32>
    %18 = vector.broadcast %16 : vector<8x1xf32> to vector<8x512xf32>
    %19 = vector.broadcast %17 : vector<1x512xf32> to vector<8x512xf32>
    %20 = arith.mulf %18, %19 : vector<8x512xf32>
    %21 = arith.addf %15, %20 : vector<8x512xf32>
    %22 = vector.extract_strided_slice %1 {offsets = [0, 3], sizes = [8, 1], strides = [1, 1]} : vector<8x4xf32> to vector<8x1xf32>
    %23 = vector.extract_strided_slice %0 {offsets = [3, 0], sizes = [1, 512], strides = [1, 1]} : vector<4x512xf32> to vector<1x512xf32>
    %24 = vector.broadcast %22 : vector<8x1xf32> to vector<8x512xf32>
    %25 = vector.broadcast %23 : vector<1x512xf32> to vector<8x512xf32>
    %26 = arith.mulf %24, %25 : vector<8x512xf32>
    %27 = arith.addf %21, %26 : vector<8x512xf32>
    %28 = vector.broadcast %3 : vector<8x1xf32> to vector<8x512xf32>
    %29 = arith.addf %27, %28 : vector<8x512xf32>
    %cst = arith.constant 0.000000e+00 : f32
    %30 = vector.broadcast %cst : f32 to vector<8x512xf32>
    %31 = arith.maximumf %29, %30 : vector<8x512xf32>
    %32 = vector.extract_strided_slice %2 {offsets = [0, 0], sizes = [8, 1], strides = [1, 1]} : vector<8x8xf32> to vector<8x1xf32>
    %33 = vector.extract_strided_slice %31 {offsets = [0, 0], sizes = [1, 512], strides = [1, 1]} : vector<8x512xf32> to vector<1x512xf32>
    %34 = vector.broadcast %32 : vector<8x1xf32> to vector<8x512xf32>
    %35 = vector.broadcast %33 : vector<1x512xf32> to vector<8x512xf32>
    %36 = arith.mulf %34, %35 : vector<8x512xf32>
    %37 = vector.extract_strided_slice %2 {offsets = [0, 1], sizes = [8, 1], strides = [1, 1]} : vector<8x8xf32> to vector<8x1xf32>
    %38 = vector.extract_strided_slice %31 {offsets = [1, 0], sizes = [1, 512], strides = [1, 1]} : vector<8x512xf32> to vector<1x512xf32>
    %39 = vector.broadcast %37 : vector<8x1xf32> to vector<8x512xf32>
    %40 = vector.broadcast %38 : vector<1x512xf32> to vector<8x512xf32>
    %41 = arith.mulf %39, %40 : vector<8x512xf32>
    %42 = arith.addf %36, %41 : vector<8x512xf32>
    %43 = vector.extract_strided_slice %2 {offsets = [0, 2], sizes = [8, 1], strides = [1, 1]} : vector<8x8xf32> to vector<8x1xf32>
    %44 = vector.extract_strided_slice %31 {offsets = [2, 0], sizes = [1, 512], strides = [1, 1]} : vector<8x512xf32> to vector<1x512xf32>
    %45 = vector.broadcast %43 : vector<8x1xf32> to vector<8x512xf32>
    %46 = vector.broadcast %44 : vector<1x512xf32> to vector<8x512xf32>
    %47 = arith.mulf %45, %46 : vector<8x512xf32>
    %48 = arith.addf %42, %47 : vector<8x512xf32>
    %49 = vector.extract_strided_slice %2 {offsets = [0, 3], sizes = [8, 1], strides = [1, 1]} : vector<8x8xf32> to vector<8x1xf32>
    %50 = vector.extract_strided_slice %31 {offsets = [3, 0], sizes = [1, 512], strides = [1, 1]} : vector<8x512xf32> to vector<1x512xf32>
    %51 = vector.broadcast %49 : vector<8x1xf32> to vector<8x512xf32>
    %52 = vector.broadcast %50 : vector<1x512xf32> to vector<8x512xf32>
    %53 = arith.mulf %51, %52 : vector<8x512xf32>
    %54 = arith.addf %48, %53 : vector<8x512xf32>
    %55 = vector.extract_strided_slice %2 {offsets = [0, 4], sizes = [8, 1], strides = [1, 1]} : vector<8x8xf32> to vector<8x1xf32>
    %56 = vector.extract_strided_slice %31 {offsets = [4, 0], sizes = [1, 512], strides = [1, 1]} : vector<8x512xf32> to vector<1x512xf32>
    %57 = vector.broadcast %55 : vector<8x1xf32> to vector<8x512xf32>
    %58 = vector.broadcast %56 : vector<1x512xf32> to vector<8x512xf32>
    %59 = arith.mulf %57, %58 : vector<8x512xf32>
    %60 = arith.addf %54, %59 : vector<8x512xf32>
    %61 = vector.extract_strided_slice %2 {offsets = [0, 5], sizes = [8, 1], strides = [1, 1]} : vector<8x8xf32> to vector<8x1xf32>
    %62 = vector.extract_strided_slice %31 {offsets = [5, 0], sizes = [1, 512], strides = [1, 1]} : vector<8x512xf32> to vector<1x512xf32>
    %63 = vector.broadcast %61 : vector<8x1xf32> to vector<8x512xf32>
    %64 = vector.broadcast %62 : vector<1x512xf32> to vector<8x512xf32>
    %65 = arith.mulf %63, %64 : vector<8x512xf32>
    %66 = arith.addf %60, %65 : vector<8x512xf32>
    %67 = vector.extract_strided_slice %2 {offsets = [0, 6], sizes = [8, 1], strides = [1, 1]} : vector<8x8xf32> to vector<8x1xf32>
    %68 = vector.extract_strided_slice %31 {offsets = [6, 0], sizes = [1, 512], strides = [1, 1]} : vector<8x512xf32> to vector<1x512xf32>
    %69 = vector.broadcast %67 : vector<8x1xf32> to vector<8x512xf32>
    %70 = vector.broadcast %68 : vector<1x512xf32> to vector<8x512xf32>
    %71 = arith.mulf %69, %70 : vector<8x512xf32>
    %72 = arith.addf %66, %71 : vector<8x512xf32>
    %73 = vector.extract_strided_slice %2 {offsets = [0, 7], sizes = [8, 1], strides = [1, 1]} : vector<8x8xf32> to vector<8x1xf32>
    %74 = vector.extract_strided_slice %31 {offsets = [7, 0], sizes = [1, 512], strides = [1, 1]} : vector<8x512xf32> to vector<1x512xf32>
    %75 = vector.broadcast %73 : vector<8x1xf32> to vector<8x512xf32>
    %76 = vector.broadcast %74 : vector<1x512xf32> to vector<8x512xf32>
    %77 = arith.mulf %75, %76 : vector<8x512xf32>
    %78 = arith.addf %72, %77 : vector<8x512xf32>
    %79 = vector.broadcast %4 : vector<8x1xf32> to vector<8x512xf32>
    %80 = arith.addf %78, %79 : vector<8x512xf32>
    %cst_6 = arith.constant 0.000000e+00 : f32
    %81 = vector.broadcast %cst_6 : f32 to vector<8x512xf32>
    %82 = arith.maximumf %80, %81 : vector<8x512xf32>
    %c0_7 = arith.constant 0 : index
    %c0_8 = arith.constant 0 : index
    %83 = vector.load %arg3[%c0_7, %c0_8] : memref<8x512xf32, #tpu.memory_space<vmem>>, vector<8x512xf32>
    tpu.vector_store %arg3[%c0_7, %c0_8], %82 {strides = array<i32>} : memref<8x512xf32, #tpu.memory_space<vmem>>, vector<8x512xf32>,
    return
  }
  func.func @transform_0(%arg0: i32) -> (i32, i32) {
    %c0_i32 = arith.constant 0 : i32
    %c0_i32_0 = arith.constant 0 : i32
    return %c0_i32, %arg0 : i32, i32
  }
  func.func @transform_1(%arg0: i32) -> (i32, i32) {
    %c0_i32 = arith.constant 0 : i32
    %c0_i32_0 = arith.constant 0 : i32
    %c0_i32_1 = arith.constant 0 : i32
    return %c0_i32, %c0_i32_0 : i32, i32
  }
  func.func @transform_2(%arg0: i32) -> (i32, i32) {
    %c0_i32 = arith.constant 0 : i32
    %c0_i32_0 = arith.constant 0 : i32
    return %c0_i32, %arg0 : i32, i32
  }
}

</mosaic_0001>

<bundles_post_ra>
// kernel: tpu_custom_call.1
= control target key start
LH: loop header
LB: loop body
LE: loop exit
PB: predicated region body
PF: predicated region fallthrough
CT: control target
= control target key end

     0   :  { %7 = vsyncpa [#allocation3], 0  ;;  %s522_s0 = inlined_call_operand.hbm [shape: f32[4,512], index: 0, kind: input, shape index: {}]   ;;  %s523_s1 = inlined_call_operand.hbm [shape: f32[8,14], index: 1, kind: input, shape index: {}]   ;;  %s524_s2 = inlined_call_operand.hbm [shape: f32[8,512], index: 2, kind: output, shape index: {}]  }
   0x1   :  { %8 = vsyncpa [#allocation6], 0 }
   0x2   :  { %9 = vsyncpa [#allocation4], 0  ;;  %s15_s11 = sshll.u32 %s522_s0, 4  ;;  %s417_s12 = smov [#allocation2]   ;;  %s16_s11 = int_to_ptr.hbm [resolvable:$true] %s15_s11 }
   0x3   :  { %s17_s13 = sshll.u32 %s417_s12, 4  ;;  %s26_s16 = sshll.u32 %s523_s1, 4  ;;  %s18_s13 = int_to_ptr.vmem [resolvable:$true] %s17_s13  ;;  %s27_s16 = int_to_ptr.hbm [resolvable:$true] %s26_s16 }
   0x4   :  { %20 = dma.hbm_to_vmem [thread:$0]  %s16_s11, 256, %s18_s13, [#allocation3]  }
   0x5   :  { %s418_s17 = smov [#allocation5]  }
   0x6   :  { %s28_s18 = sshll.u32 %s418_s17, 4  ;;  %s29_s18 = int_to_ptr.vmem [resolvable:$true] %s28_s18 }
   0x7   :  { %31 = dma.hbm_to_vmem [thread:$0]  %s27_s16, 128, %s29_s18, [#allocation6]  }
   0x8   :  { %411 = dma.done.wait [#allocation3], 256  }
   0x9   :  { %412 = vsyncadd [#allocation3], 4294967040 }
   0xa   :  { %413 = dma.done.wait [#allocation6], 128  }
   0xb   :  { %414 = vsyncadd [#allocation6], 4294967168  ;;  %v419_v0 = vmov 2   ;;  %v420_v1 = vmov 0   ;;  %v421_v2 = vmov 12   ;;  %v42_v3 = vld [vmem:[#allocation5] sm:$0xff] }
   0xc   :  { %327 = vset.pattern.permute.xlu1 %v419_v0  ;;  %325 = vset.pattern.permute.xlu0 %v420_v1  ;;  %v422_v4 = vmov 3   ;;  %v423_v5 = vmov 1   ;;  %v424_v6 = vmov 4   ;;  %v425_v7 = vmov 5   ;;  %v40_v18 = vld [vmem:[#allocation2] sm:$0xff]  ;;  %v41_v19 = vld [vmem:[#allocation2 + $0x8] sm:$0xff] }
   0xd   :  { %329 = vset.pattern.permute.xlu2 %v421_v2  ;;  %91 = vperm.xlu1 %327, %v42_v3   ;;  %v426_v8 = vmov 7   ;;  %v427_v9 = vmov 6   ;;  %v428_v10 = vmov 8   ;;  %v429_v11 = vmov 13   ;;  %s433_s0 = smov [#allocation7]   ;;  %s297_s21 = sshll.u32 %s524_s2, 4  ;;  %s298_s21 = int_to_ptr.hbm [resolvable:$true] %s297_s21 }
   0xe   :  { %45 = vperm.xlu0 %325, %v42_v3   ;;  %139 = vperm.xlu2 %329, %v42_v3   ;;  %v430_v12 = vmov 9   ;;  %v431_v13 = vmov 10   ;;  %v432_v14 = vmov 11   ;;  %v50_v20 = vperm.slane %v40_v18, 0  ;;  %s295_s1 = sshll.u32 %s433_s0, 4  ;;  %s296_s1 = int_to_ptr.vmem [resolvable:$true] %s295_s1 }
   0xf   :  { %v51_v21 = vperm.slane %v40_v18, 4  ;;  %v52_v22 = vperm.slane %v41_v19, 0  ;;  %v53_v23 = vperm.slane %v41_v19, 4  ;;  %v70_v24 = vperm.slane %v40_v18, 1 }
  0x10   :  { %v71_v25 = vperm.slane %v40_v18, 5  ;;  %v72_v26 = vperm.slane %v41_v19, 1  ;;  %v73_v27 = vperm.slane %v41_v19, 5  ;;  %v94_v28 = vperm.slane %v40_v18, 2 }
  0x11   :  { %v95_v29 = vperm.slane %v40_v18, 6  ;;  %v96_v30 = vperm.slane %v41_v19, 2  ;;  %v97_v31 = vperm.slane %v41_v19, 6  ;;  %v118_v32 = vperm.slane %v40_v18, 3 }
  0x12   :  { %v119_v33 = vperm.slane %v40_v18, 7  ;;  %v120_v34 = vperm.slane %v41_v19, 3  ;;  %v121_v35 = vperm.slane %v41_v19, 7  ;;  %v58_v36 = vperm.slane %v50_v20, 0 }
  0x13   :  { %v59_v37 = vperm.slane %v51_v21, 0  ;;  %v60_v38 = vperm.slane %v52_v22, 0  ;;  %v61_v39 = vperm.slane %v53_v23, 0  ;;  %v78_v41 = vperm.slane %v70_v24, 1 }
  0x14   :  { %v79_v42 = vperm.slane %v71_v25, 1  ;;  %v80_v43 = vperm.slane %v72_v26, 1  ;;  %v81_v44 = vperm.slane %v73_v27, 1  ;;  %v102_v45 = vperm.slane %v94_v28, 2 }
  0x15   :  { %328 = vset.pattern.permute.xlu1 %v422_v4  ;;  %v103_v46 = vperm.slane %v95_v29, 2  ;;  %v104_v47 = vperm.slane %v96_v30, 2  ;;  %v105_v48 = vperm.slane %v97_v31, 2  ;;  %v126_v50 = vperm.slane %v118_v32, 3 }
  0x16   :  { %326 = vset.pattern.permute.xlu0 %v423_v5  ;;  %115 = vperm.xlu1 %328, %v42_v3   ;;  %v127_v51 = vperm.slane %v119_v33, 3  ;;  %v128_v52 = vperm.slane %v120_v34, 3  ;;  %v129_v53 = vperm.slane %v121_v35, 3 }
  0x17   :  { %67 = vperm.xlu0 %326, %v42_v3   ;;  %330 = vset.pattern.permute.xlu2 %v424_v6 }
  0x18   :  { %151 = vperm.xlu2 %330, %v42_v3  }
  0x1e   :  { %331 = vset.pattern.permute.xlu1 %v425_v7 }
  0x1f   :  { %333 = vset.pattern.permute.xlu0 %v426_v8  ;;  %163 = vperm.xlu1 %331, %v42_v3  }
  0x20   :  { %195 = vperm.xlu0 %333, %v42_v3   ;;  %332 = vset.pattern.permute.xlu2 %v427_v9 }
  0x21   :  { %179 = vperm.xlu2 %332, %v42_v3  }
  0x27   :  { %334 = vset.pattern.permute.xlu1 %v428_v10 }
  0x28   :  { %338 = vset.pattern.permute.xlu0 %v429_v11  ;;  %211 = vperm.xlu1 %334, %v42_v3  }
  0x29   :  { %275 = vperm.xlu0 %338, %v42_v3   ;;  %335 = vset.pattern.permute.xlu2 %v430_v12 }
  0x2a   :  { %227 = vperm.xlu2 %335, %v42_v3  }
  0x30   :  { %336 = vset.pattern.permute.xlu1 %v431_v13 }
  0x31   :  { %243 = vperm.xlu1 %336, %v42_v3  }
  0x32   :  { %337 = vset.pattern.permute.xlu2 %v432_v14 }
  0x33   :  { %259 = vperm.xlu2 %337, %v42_v3  }
  0x68   :  { %v455_v15 = vpop.permute.xlu2 %139 }
  0x72   :  { %v457_v40 = vpop.permute.xlu2 %151 }
  0x7f   :  { %v92_v16 = vpop.permute.xlu1 %91 }
  0x80   :  { %v46_v17 = vpop.permute.xlu0 %45  ;;  %v106_v63 = vmul.f32 %v102_v45, %v92_v16  ;;  %v107_v0 = vmul.f32 %v103_v46, %v92_v16  ;;  %v108_v1 = vmul.f32 %v104_v47, %v92_v16  ;;  %v109_v2 = vmul.f32 %v105_v48, %v92_v16 }
  0x81   :  { %v62_v55 = vmul.f32 %v58_v36, %v46_v17  ;;  %v63_v56 = vmul.f32 %v59_v37, %v46_v17  ;;  %v64_v57 = vmul.f32 %v60_v38, %v46_v17  ;;  %v65_v58 = vmul.f32 %v61_v39, %v46_v17  ;;  %v180_v17 = vpop.permute.xlu2 %179 }
  0x88   :  { %v116_v49 = vpop.permute.xlu1 %115 }
  0x89   :  { %v68_v54 = vpop.permute.xlu0 %67  ;;  %v130_v7 = vmul.f32 %v126_v50, %v116_v49  ;;  %v131_v8 = vmul.f32 %v127_v51, %v116_v49  ;;  %v132_v9 = vmul.f32 %v128_v52, %v116_v49  ;;  %v133_v10 = vmul.f32 %v129_v53, %v116_v49 }
  0x8a   :  { %v82_v59 = vmul.f32 %v78_v41, %v68_v54  ;;  %v83_v60 = vmul.f32 %v79_v42, %v68_v54  ;;  %v84_v61 = vmul.f32 %v80_v43, %v68_v54  ;;  %v85_v62 = vmul.f32 %v81_v44, %v68_v54  ;;  %v228_v42 = vpop.permute.xlu2 %227 }
  0x8c   :  { %v86_v3 = vadd.f32 %v82_v59, %v62_v55  ;;  %v87_v4 = vadd.f32 %v83_v60, %v63_v56  ;;  %v88_v5 = vadd.f32 %v84_v61, %v64_v57  ;;  %v89_v6 = vadd.f32 %v85_v62, %v65_v58 }
  0x8e   :  { %v110_v11 = vadd.f32 %v106_v63, %v86_v3  ;;  %v111_v12 = vadd.f32 %v107_v0, %v87_v4  ;;  %v112_v13 = vadd.f32 %v108_v1, %v88_v5  ;;  %v113_v14 = vadd.f32 %v109_v2, %v89_v6 }
  0x90   :  { %v134_v18 = vadd.f32 %v130_v7, %v110_v11  ;;  %v135_v19 = vadd.f32 %v131_v8, %v111_v12  ;;  %v136_v20 = vadd.f32 %v132_v9, %v112_v13  ;;  %v137_v21 = vadd.f32 %v133_v10, %v113_v14 }
  0x91   :  { %v164_v25 = vpop.permute.xlu1 %163 }
  0x92   :  { %v142_v22 = vadd.f32 %v455_v15, %v134_v18  ;;  %v143_v16 = vadd.f32 %v455_v15, %v135_v19  ;;  %v144_v23 = vadd.f32 %v455_v15, %v136_v20  ;;  %v145_v24 = vadd.f32 %v455_v15, %v137_v21  ;;  %v196_v63 = vpop.permute.xlu0 %195 }
  0x94   :  { %v463_v26 = vmax.f32 %v142_v22, 0.0  ;;  %v465_v27 = vmax.f32 %v143_v16, 0.0  ;;  %v467_v28 = vmax.f32 %v144_v23, 0.0  ;;  %v469_v29 = vmax.f32 %v145_v24, 0.0 }
  0x96   :  { %v230_v30 = vperm.slane %v463_v26, 5  ;;  %v231_v31 = vperm.slane %v465_v27, 5  ;;  %v232_v32 = vperm.slane %v467_v28, 5  ;;  %v233_v33 = vperm.slane %v469_v29, 5 }
  0x97   :  { %v154_v34 = vperm.slane %v463_v26, 0  ;;  %v155_v15 = vperm.slane %v465_v27, 0  ;;  %v156_v35 = vperm.slane %v467_v28, 0  ;;  %v157_v36 = vperm.slane %v469_v29, 0 }
  0x98   :  { %v166_v43 = vperm.slane %v463_v26, 1  ;;  %v167_v44 = vperm.slane %v465_v27, 1  ;;  %v168_v45 = vperm.slane %v467_v28, 1  ;;  %v169_v46 = vperm.slane %v469_v29, 1 }
  0x99   :  { %v158_v37 = vmul.f32 %v154_v34, %v457_v40  ;;  %v159_v38 = vmul.f32 %v155_v15, %v457_v40  ;;  %v160_v39 = vmul.f32 %v156_v35, %v457_v40  ;;  %v161_v41 = vmul.f32 %v157_v36, %v457_v40 }
  0x9a   :  { %v487_v47 = vmul.f32 %v230_v30, %v228_v42  ;;  %v489_v48 = vmul.f32 %v231_v31, %v228_v42  ;;  %v491_v49 = vmul.f32 %v232_v32, %v228_v42  ;;  %v493_v50 = vmul.f32 %v233_v33, %v228_v42  ;;  %v212_v54 = vpop.permute.xlu1 %211  ;;  %v260_v42 = vpop.permute.xlu2 %259 }
  0x9b   :  { %v170_v51 = vmul.f32 %v166_v43, %v164_v25  ;;  %v171_v52 = vmul.f32 %v167_v44, %v164_v25  ;;  %v172_v40 = vmul.f32 %v168_v45, %v164_v25  ;;  %v173_v53 = vmul.f32 %v169_v46, %v164_v25 }
  0x9c   :  { %v262_v55 = vperm.slane %v463_v26, 7  ;;  %v263_v56 = vperm.slane %v465_v27, 7  ;;  %v264_v57 = vperm.slane %v467_v28, 7  ;;  %v265_v58 = vperm.slane %v469_v29, 7 }
  0x9d   :  { %v174_v59 = vadd.f32 %v170_v51, %v158_v37  ;;  %v175_v60 = vadd.f32 %v171_v52, %v159_v38  ;;  %v176_v61 = vadd.f32 %v172_v40, %v160_v39  ;;  %v177_v62 = vadd.f32 %v173_v53, %v161_v41 }
  0x9e   :  { %v182_v0 = vperm.slane %v463_v26, 2  ;;  %v183_v1 = vperm.slane %v465_v27, 2  ;;  %v184_v2 = vperm.slane %v467_v28, 2  ;;  %v185_v3 = vperm.slane %v469_v29, 2 }
  0x9f   :  { %v198_v4 = vperm.slane %v463_v26, 3  ;;  %v199_v5 = vperm.slane %v465_v27, 3  ;;  %v200_v6 = vperm.slane %v467_v28, 3  ;;  %v201_v7 = vperm.slane %v469_v29, 3 }
  0xa0   :  { %v186_v8 = vmul.f32 %v182_v0, %v180_v17  ;;  %v187_v9 = vmul.f32 %v183_v1, %v180_v17  ;;  %v188_v10 = vmul.f32 %v184_v2, %v180_v17  ;;  %v189_v11 = vmul.f32 %v185_v3, %v180_v17  ;;  %v276_v2 = vpop.permute.xlu0 %275 }
  0xa1   :  { %v202_v12 = vmul.f32 %v198_v4, %v196_v63  ;;  %v203_v13 = vmul.f32 %v199_v5, %v196_v63  ;;  %v204_v14 = vmul.f32 %v200_v6, %v196_v63  ;;  %v205_v18 = vmul.f32 %v201_v7, %v196_v63 }
  0xa2   :  { %v190_v19 = vadd.f32 %v186_v8, %v174_v59  ;;  %v191_v20 = vadd.f32 %v187_v9, %v175_v60  ;;  %v192_v21 = vadd.f32 %v188_v10, %v176_v61  ;;  %v193_v22 = vadd.f32 %v189_v11, %v177_v62 }
  0xa3   :  { %v214_v16 = vperm.slane %v463_v26, 4  ;;  %v215_v23 = vperm.slane %v465_v27, 4  ;;  %v216_v24 = vperm.slane %v467_v28, 4  ;;  %v217_v25 = vperm.slane %v469_v29, 4  ;;  %v244_v36 = vpop.permute.xlu1 %243 }
  0xa4   :  { %v206_v30 = vadd.f32 %v202_v12, %v190_v19  ;;  %v207_v31 = vadd.f32 %v203_v13, %v191_v20  ;;  %v208_v32 = vadd.f32 %v204_v14, %v192_v21  ;;  %v209_v17 = vadd.f32 %v205_v18, %v193_v22 }
  0xa5   :  { %v218_v33 = vmul.f32 %v214_v16, %v212_v54  ;;  %v219_v34 = vmul.f32 %v215_v23, %v212_v54  ;;  %v220_v15 = vmul.f32 %v216_v24, %v212_v54  ;;  %v221_v35 = vmul.f32 %v217_v25, %v212_v54 }
  0xa6   :  { %v246_v37 = vperm.slane %v463_v26, 6  ;;  %v247_v38 = vperm.slane %v465_v27, 6  ;;  %v248_v39 = vperm.slane %v467_v28, 6  ;;  %v249_v41 = vperm.slane %v469_v29, 6 }
  0xa7   :  { %v222_v43 = vadd.f32 %v218_v33, %v206_v30  ;;  %v223_v44 = vadd.f32 %v219_v34, %v207_v31  ;;  %v224_v45 = vadd.f32 %v220_v15, %v208_v32  ;;  %v225_v46 = vadd.f32 %v221_v35, %v209_v17 }
  0xa8   :  { %v250_v51 = vmul.f32 %v246_v37, %v244_v36  ;;  %v251_v52 = vmul.f32 %v247_v38, %v244_v36  ;;  %v252_v40 = vmul.f32 %v248_v39, %v244_v36  ;;  %v253_v53 = vmul.f32 %v249_v41, %v244_v36 }
  0xa9   :  { %v238_v54 = vadd.f32 %v487_v47, %v222_v43  ;;  %v239_v59 = vadd.f32 %v489_v48, %v223_v44  ;;  %v240_v26 = vadd.f32 %v491_v49, %v224_v45  ;;  %v241_v27 = vadd.f32 %v493_v50, %v225_v46 }
  0xaa   :  { %v266_v28 = vmul.f32 %v262_v55, %v260_v42  ;;  %v267_v60 = vmul.f32 %v263_v56, %v260_v42  ;;  %v268_v29 = vmul.f32 %v264_v57, %v260_v42  ;;  %v269_v61 = vmul.f32 %v265_v58, %v260_v42 }
  0xab   :  { %v254_v62 = vadd.f32 %v250_v51, %v238_v54  ;;  %v255_v63 = vadd.f32 %v251_v52, %v239_v59  ;;  %v256_v0 = vadd.f32 %v252_v40, %v240_v26  ;;  %v257_v1 = vadd.f32 %v253_v53, %v241_v27 }
  0xad   :  { %v270_v3 = vadd.f32 %v266_v28, %v254_v62  ;;  %v271_v4 = vadd.f32 %v267_v60, %v255_v63  ;;  %v272_v5 = vadd.f32 %v268_v29, %v256_v0  ;;  %v273_v6 = vadd.f32 %v269_v61, %v257_v1 }
  0xaf   :  { %v278_v47 = vadd.f32 %v276_v2, %v270_v3  ;;  %v279_v7 = vadd.f32 %v276_v2, %v271_v4  ;;  %v280_v48 = vadd.f32 %v276_v2, %v272_v5  ;;  %v281_v8 = vadd.f32 %v276_v2, %v273_v6 }
  0xb1   :  { %v282_v49 = vmax.f32 %v278_v47, 0.0  ;;  %v283_v9 = vmax.f32 %v279_v7, 0.0  ;;  %v284_v50 = vmax.f32 %v280_v48, 0.0  ;;  %v285_v55 = vmax.f32 %v281_v8, 0.0 }
  0xb3   :  { %286 = vst [vmem:[#allocation7] sm:$0xff] %v282_v49 }
  0xb4   :  { %287 = vst [vmem:[#allocation7 + $0x8] sm:$0xff] %v283_v9 }
  0xb5   :  { %288 = vst [vmem:[#allocation7 + $0x10] sm:$0xff] %v284_v50 }
  0xb6   :  { %289 = vst [vmem:[#allocation7 + $0x18] sm:$0xff] %v285_v55 }
  0xb7   :  { %300 = dma.vmem_to_hbm [thread:$0]  %s296_s1, 512, %s298_s21, [#allocation4]  }
  0xb8   :  { %415 = dma.done.wait [#allocation4], 512  }
  0xb9   :  { %416 = vsyncadd [#allocation4], 4294966784 }
  0xba   :  { %305 = vsyncpa [#allocation3], 1 }
  0xbb   :  { %306 = vsyncpa [#allocation6], 1 }
  0xbc   :  { %307 = vsyncpa [#allocation4], 1 }

</bundles_post_ra>
